<compile_context>
chip_gen: v6e
topology: v6e:2x2x1
jax: 0.10.0
libtpu: 0.0.40
codegen_flags: <defaults>
</compile_context>

<pallas_src>
import math

import jax
import jax.numpy as jnp
from jax.experimental import pallas as pl
from jax.experimental.pallas import tpu as pltpu


def _copy_kernel(x_ref, o_ref):
    # Pure identity copy: straight vld/vst, no relayout, no compute.
    o_ref[...] = x_ref[...]


def _chip_params():
    """Generation-aware (block_bytes, vmem_limit_bytes, want_multi_step)."""
    kind = ""
    try:
        kind = jax.devices()[0].device_kind.lower()
    except Exception:
        pass
    if "v7" in kind or "7x" in kind:
        # v7x: ~3.2 TB/s HBM -> big blocks to amortize ~0.35 us/step overhead,
        # but only 64 MiB VMEM: 2 arrays x 2 buffers x 8 MiB = 32 MiB < 48 MiB.
        return 8 << 20, 48 << 20, True
    if "v6" in kind:
        # v6e: 128 MiB physical VMEM; raise the 32 MiB scoped default.
        return 6 << 20, 64 << 20, False
    if "v5" in kind:
        # v5e: 16 MiB scoped default; 3 MiB blocks (4x residency = 12 MiB)
        # fit without raising it, and per-step overhead is already <8% here.
        return 3 << 20, None, False
    # Unknown generation: conservative defaults.
    return 2 << 20, None, False


def _pick_tm(rows, lane, itemsize, block_bytes, sub, want_multi_step):
    """Rows per block: sublane-multiple, fits block_bytes, prefers even split."""
    target = max(sub, (block_bytes // (lane * itemsize)) // sub * sub)
    if rows <= target:
        return rows                       # single full-dim block (always legal)
    if want_multi_step:
        # v7x: keep >= 4 grid steps so the "parallel" axis feeds both TCs.
        quarter = -(-rows // 4)
        quarter = max(sub, -(-quarter // sub) * sub)
        target = min(target, quarter)
    # Prefer the largest sublane-multiple <= target that divides rows evenly
    # (no ragged / masked last tile), unless that shrinks the block > 2x.
    t = target
    while t >= sub:
        if rows % t == 0:
            if 2 * t >= target:
                return t
            break
        t -= sub
    return target


def _tiled_copy(x2d):
    """Tiled, double-buffered identity copy of a lane-dense 2D slab."""
    rows, lane = x2d.shape
    itemsize = jnp.dtype(x2d.dtype).itemsize
    # Packed-sublane multiple: f32 -> 8, bf16/f16 -> 16, int8/fp8 -> 32.
    sub = max(8, 32 // itemsize)
    block_bytes, vmem_limit, want_multi_step = _chip_params()
    tm = _pick_tm(rows, lane, itemsize, block_bytes, sub, want_multi_step)
    grid = (pl.cdiv(rows, tm),)

    return pl.pallas_call(
        _copy_kernel,
        out_shape=jax.ShapeDtypeStruct((rows, lane), x2d.dtype),
        grid=grid,
        in_specs=[pl.BlockSpec((tm, lane), lambda i: (i, 0))],
        out_specs=pl.BlockSpec((tm, lane), lambda i: (i, 0)),
        # Reuse the (donated) input buffer for the output: halves HBM footprint
        # and lets XLA elide the allocation when the producer is fused/donated.
        input_output_aliases={0: 0},
        compiler_params=pltpu.CompilerParams(
            dimension_semantics=("parallel",),
            vmem_limit_bytes=vmem_limit),
        cost_estimate=pl.CostEstimate(
            flops=0, transcendentals=0,
            bytes_accessed=2 * rows * lane * itemsize),
    )(x2d)


_LANE_CANDIDATES = (8192, 4096, 2048, 1024, 512, 256, 128)


def squeeze_pallas(x):
    """Equivalent of torch.Tensor.squeeze(): removes all size-1 dims."""
    out_shape = tuple(d for d in x.shape if d != 1)

    # Nothing to squeeze: metadata-only no-op, skip the HBM round trip.
    if out_shape == x.shape:
        return x

    # All dims are size 1: rank-0 Pallas outputs don't lower cleanly; the
    # result is a scalar view, handled as pure metadata.
    if out_shape == ():
        return jnp.reshape(x, ())

    total = math.prod(x.shape)

    # Largest multiple of 128 dividing the element count -> unmasked stores.
    lane = next((c for c in _LANE_CANDIDATES if total % c == 0), None)
    if lane is None:
        # Element count not a multiple of 128: a Pallas copy would be all
        # masked vst.msk partial stores; squeeze is metadata-only, so a free
        # XLA reshape is strictly better here.
        return jnp.reshape(x, out_shape)

    rows = total // lane
    x2d = jnp.reshape(x, (rows, lane))      # free / fused by XLA
    y2d = _tiled_copy(x2d)                  # Pallas tiled identity copy
    return jnp.reshape(y2d, out_shape)      # free / fused by XLA


if __name__ == "__main__":
    key = jax.random.PRNGKey(0)
    # Small NCHW input with a size-1 channel dim so the squeeze is non-trivial.
    x = jax.random.normal(key, (2, 1, 16, 16), dtype=jnp.float32)

    y = squeeze_pallas(x)
    jax.block_until_ready(y)

    # Check against the pure-JAX reference.
    y_ref = jnp.squeeze(x)
    assert y.shape == y_ref.shape, (y.shape, y_ref.shape)
    assert y.dtype == y_ref.dtype, (y.dtype, y_ref.dtype)
    assert bool(jnp.all(y == y_ref))

    print("KERNEL_OK")
</pallas_src>

<mosaic_0001>
module attributes {stable_mosaic.version = 11 : i64} {
  func.func @_copy_kernel(%arg0: i32, %arg1: memref<1x512xf32, #tpu.memory_space<vmem>>, %arg2: memref<1x512xf32, #tpu.memory_space<vmem>>) attributes {dimension_semantics = [#tpu.dimension_semantics<parallel>], iteration_bounds = array<i64: 1>, scalar_prefetch = 0 : i64, scratch_operands = 0 : i64, tpu.core_type = #tpu.core_type<tc>, window_params = [{transform_indices = @transform_0, window_bounds = array<i64: 1, 512>}, {transform_indices = @transform_1, window_bounds = array<i64: 1, 512>}]} {
    %c0 = arith.constant 0 : index
    %c0_0 = arith.constant 0 : index
    %0 = vector.load %arg1[%c0, %c0_0] : memref<1x512xf32, #tpu.memory_space<vmem>>, vector<1x512xf32>
    %c0_1 = arith.constant 0 : index
    %c0_2 = arith.constant 0 : index
    %1 = vector.load %arg2[%c0_1, %c0_2] : memref<1x512xf32, #tpu.memory_space<vmem>>, vector<1x512xf32>
    tpu.vector_store %arg2[%c0_1, %c0_2], %0 {strides = array<i32>} : memref<1x512xf32, #tpu.memory_space<vmem>>, vector<1x512xf32>,
    return
  }
  func.func @transform_0(%arg0: i32) -> (i32, i32) {
    %c0_i32 = arith.constant 0 : i32
    %c0_i32_0 = arith.constant 0 : i32
    return %arg0, %c0_i32 : i32, i32
  }
  func.func @transform_1(%arg0: i32) -> (i32, i32) {
    %c0_i32 = arith.constant 0 : i32
    %c0_i32_0 = arith.constant 0 : i32
    return %arg0, %c0_i32 : i32, i32
  }
}

</mosaic_0001>

<bundles_post_ra>
// kernel: tpu_custom_call.1
= control target key start
LH: loop header
LB: loop body
LE: loop exit
PB: predicated region body
PF: predicated region fallthrough
CT: control target
= control target key end

     0   :  { %6 = vsyncpa [#allocation3], 0  ;;  %s106_s0 = inlined_call_operand.hbm [shape: f32[1,512], index: 0, kind: input, shape index: {}, may-alias: {0,1}]   ;;  %s107_s1 = inlined_call_operand.hbm [shape: f32[1,512], index: 1, kind: output, shape index: {}, may-alias: {0,1}]  }
   0x1   :  { %7 = vsyncpa [#allocation4], 0  ;;  %s88_s6 = smov [#allocation2]  }
   0x2   :  { %s14_s7 = sshll.u32 %s88_s6, 4  ;;  %s15_s7 = int_to_ptr.vmem [resolvable:$true] %s14_s7 }
   0x3   :  { %s52_s8 = scalar_lea.vmem %s15_s7, 64  ;;  %p57_p1 = scmp.lt.s32.totalorder %s15_s7, %s15_s7 }
   0x4   :  { %p53_p0 = scmp.ne.s32.totalorder %s15_s7, %s52_s8  ;;  %p58_p2 = scmp.lt.s32.totalorder %s52_s8, %s52_s8 }
   0x6   :  { %p59_p3 = por %p58_p2, %p57_p1 }
   0x8   :  { %p60_p4 = pnand %p59_p3, %p53_p0 }
   0xa   :  { %63 = shalt.err (!%p60_p4)
}
   0xb   :  { %17 = dma.hbm_to_vmem [thread:$0]  %s106_s0, 64, %s15_s7, [#allocation3]  }
   0xc   :  { %84 = dma.done.wait [#allocation3], 64  }
   0xd   :  { %85 = vsyncadd [#allocation3], 4294967232  ;;  %v22_v0 = vlaneseq  ;;  %s89_s11 = smov [#allocation5]   ;;  %v21_v1 = vld [vmem:[#allocation2] sm:$0xf] }
   0xe   :  { %s33_s12 = sshll.u32 %s89_s11, 4  ;;  %s34_s12 = int_to_ptr.vmem [resolvable:$true] %s33_s12 }
   0xf   :  { %vm24_vm0 = vcmp.lt.s32.totalorder %v22_v0, 512  ;;  %s64_s13 = scalar_lea.vmem %s34_s12, 64  ;;  %p69_p6 = scmp.lt.s32.totalorder %s34_s12, %s34_s12 }
  0x10   :  { %26 = vst.msk [vmem:[#allocation5] sm:$0xf] %vm24_vm0, %v21_v1  ;;  %p65_p5 = scmp.ne.s32.totalorder %s34_s12, %s64_s13  ;;  %p70_p7 = scmp.lt.s32.totalorder %s64_s13, %s64_s13 }
  0x12   :  { %p71_p8 = por %p70_p7, %p69_p6 }
  0x14   :  { %p72_p9 = pnand %p71_p8, %p65_p5 }
  0x16   :  { %75 = shalt.err (!%p72_p9)
}
  0x17   :  { %36 = dma.vmem_to_hbm [thread:$0]  %s34_s12, 64, %s107_s1, [#allocation4]  }
  0x18   :  { %86 = dma.done.wait [#allocation4], 64  }
  0x19   :  { %87 = vsyncadd [#allocation4], 4294967232 }
  0x1a   :  { %40 = vsyncpa [#allocation3], 1 }
  0x1b   :  { %41 = vsyncpa [#allocation4], 1 }

</bundles_post_ra>
